<compile_context>
chip_gen: v6e
topology: v6e:2x2x1
jax: 0.10.0
libtpu: 0.0.40
codegen_flags: <defaults>
</compile_context>

<pallas_src>
import functools

import jax
import jax.numpy as jnp
from jax.experimental import pallas as pl
from jax.experimental.pallas import tpu as pltpu

EMBED_DIM = 192     # fixed by nn.Linear(192, output_dim) in the module
E_PAD = 256         # lane-dense padded embed dim (zeros, mathematically exact)
OUTPUT_DIM = 128    # default output_dim

_K0 = 0.7978845608028654          # sqrt(2/pi)
_K1 = _K0 * 0.044715


def _gelu(x):
    # tanh-approx GELU, factored to minimize VPU ops: tanh goes to the EUP slot,
    # polynomial is x*(K0 + K1*x^2), and the 0.5 is folded into the final FMA.
    # TODO(synk): the real backbone may use exact (erf) GELU; tanh approx used here.
    t = jnp.tanh(x * (_K0 + _K1 * (x * x)))
    return x * (0.5 + 0.5 * t)


def feature_proj_kernel(patches_ref, pw_ref, pb_ref, fw_ref, fb_ref, out_ref,
                        acc_ref, *, bt, tn, n_tokens):
    # patches_ref: (bt, tn, P) bf16      pw_ref: (P, E_PAD) bf16
    # pb_ref:      (1, E_PAD) f32        fw_ref: (E_PAD, OUTPUT_DIM) f32
    # fb_ref:      (1, OUTPUT_DIM) f32   out_ref: (bt, OUTPUT_DIM) f32
    # acc_ref:     (bt, E_PAD) f32 scratch -- running token sum per batch row
    k = pl.program_id(1)

    @pl.when(k == 0)
    def _():
        acc_ref[...] = jnp.zeros_like(acc_ref)

    # --- synthetic backbone: patch-embed matmul (bf16 MXU, f32 accumulate) ---
    # NOTE: with small patch_dim the MXU contraction dim is underfilled; if the
    # backbone config is negotiable, pick C*ps^2 as a multiple of 128 (do NOT
    # zero-pad patch_dim in HBM -- that doubles streamed bytes).
    x = patches_ref[...]
    p_dim = x.shape[-1]
    x2d = x.reshape(bt * tn, p_dim)                                   # (bt*tn, P)
    feats = jnp.dot(x2d, pw_ref[...], preferred_element_type=jnp.float32)
    feats = _gelu(feats + pb_ref[...])                                # (bt*tn, E_PAD) f32
    # TODO(synk): on v6e/v7x the GELU polynomial could run in bf16 (~2x VPU
    # throughput); kept f32 here to match the f32-GELU reference numerics.

    # --- fused token-mean: accumulate per-batch token sums in f32 scratch ---
    feats = feats.reshape(bt, tn, E_PAD)
    acc_ref[...] += jnp.sum(feats, axis=1)                            # (bt, E_PAD)

    # --- finalize: scale by 1/N and project 192(->256 padded) -> 128 ---
    @pl.when(k == pl.num_programs(1) - 1)
    def _():
        pooled = acc_ref[...] * (1.0 / n_tokens)                      # (bt, E_PAD)
        out = jnp.dot(pooled, fw_ref[...], preferred_element_type=jnp.float32)
        out_ref[...] = (out + fb_ref[...]).astype(out_ref.dtype)


def init_params(key, patch_dim):
    k1, k2, k3 = jax.random.split(key, 3)
    patch_w = jax.random.normal(k1, (patch_dim, EMBED_DIM), jnp.float32) * 0.02
    patch_b = jnp.zeros((1, EMBED_DIM), jnp.float32)
    # nn.Linear default init: U(-1/sqrt(fan_in), 1/sqrt(fan_in)) with fan_in=192
    bound = 1.0 / (EMBED_DIM ** 0.5)
    fc_w = jax.random.uniform(k2, (EMBED_DIM, OUTPUT_DIM), jnp.float32, -bound, bound)
    fc_b = jax.random.uniform(k3, (1, OUTPUT_DIM), jnp.float32, -bound, bound)
    return {"patch_w": patch_w, "patch_b": patch_b, "fc_w": fc_w, "fc_b": fc_b}


def _choose_tile(total, target, align):
    """Largest multiple of `align` dividing `total` that is <= target (or `total`)."""
    if total <= target:
        return total
    best = None
    t = align
    while t <= target:
        if total % t == 0:
            best = t
        t += align
    return best if best is not None else total


def _vmem_budget_bytes():
    # Derive from hardware: v7x has 64 MiB VMEM/core, v5e/v6e have 128 MiB.
    try:
        info = pltpu.get_tpu_info()
        cap = int(getattr(info, "vmem_capacity_bytes", 64 * 1024 * 1024))
    except Exception:
        cap = 64 * 1024 * 1024
    return max(32 * 1024 * 1024, min(96 * 1024 * 1024, (3 * cap) // 4))


@functools.partial(jax.jit, static_argnames=("patch_size", "batch_tile", "token_tile"))
def feature_extractor_with_projection(x, params, patch_size=4,
                                      batch_tile=None, token_tile=None):
    B, C, H, W = x.shape
    ps = patch_size
    nH, nW = H // ps, W // ps
    n_tokens = nH * nW
    patch_dim = C * ps * ps

    # --- glue: NCHW -> (B, N, P) patch tensor, cast to bf16 BEFORE staging.
    # Because this wrapper is jitted and the pallas_call below sets
    # allow_input_fusion, XLA may fuse this transpose/reshape/cast into the
    # kernel's input DMA instead of round-tripping a (B,N,P) bf16 tensor via HBM.
    xb = x.astype(jnp.bfloat16)
    patches = xb.reshape(B, C, nH, ps, nW, ps)
    patches = patches.transpose(0, 2, 4, 1, 3, 5).reshape(B, n_tokens, patch_dim)
    # TODO(synk): for very large deployments, gather patches straight from x
    # inside the kernel (memory_space=pl.ANY + manual DMA over nH/nW) instead.

    # --- weights: pad embed dim 192 -> 256 with zeros (exact; gelu(0+0)=0 and
    # padded fc_w rows are zero, so padded lanes never contaminate the output).
    pw = jnp.zeros((patch_dim, E_PAD), jnp.bfloat16)
    pw = pw.at[:, :EMBED_DIM].set(params["patch_w"].astype(jnp.bfloat16))
    pb = jnp.zeros((1, E_PAD), jnp.float32).at[:, :EMBED_DIM].set(params["patch_b"])
    fw = jnp.zeros((E_PAD, OUTPUT_DIM), jnp.float32).at[:EMBED_DIM, :].set(params["fc_w"])
    fb = params["fc_b"]

    vmem_limit = _vmem_budget_bytes()

    # --- batch tile: multiple of 8, grown toward 16-32, but keep >=2 steps on
    # the "parallel" batch axis when B allows it (v7x megacore sharding). ---
    if batch_tile is not None:
        bt = batch_tile
    elif B <= 8:
        bt = B
    else:
        bt = _choose_tile(B, max(8, min(32, B // 2)), 8)
    assert bt == B or (bt % 8 == 0 and B % bt == 0), "bad batch tile"

    # --- token tile: multiple of 16 (bf16 sublane packing), sized so the
    # double-buffered bf16 patch block + f32 feats intermediate fit VMEM. ---
    if token_tile is not None:
        tn = token_tile
    else:
        bytes_per_token = bt * (2 * patch_dim * 2 + E_PAD * 4)
        tn_cap = max(16, ((vmem_limit // 3) // bytes_per_token) // 16 * 16)
        tn = _choose_tile(n_tokens, min(tn_cap, 4096), 16)
    assert n_tokens % tn == 0 and (tn == n_tokens or tn % 16 == 0), "bad token tile"

    # Hard VMEM-fit check: guards _choose_tile's fall-back-to-full-extent path.
    weight_bytes = pw.size * 2 + pb.size * 4 + fw.size * 4 + fb.size * 4
    vmem_est = (2 * bt * tn * patch_dim * 2      # double-buffered patches block
                + bt * tn * E_PAD * 4            # f32 feats intermediate
                + bt * E_PAD * 4                 # accumulator scratch
                + 2 * weight_bytes               # (double-buffered) weights
                + 2 * bt * OUTPUT_DIM * 4)       # output block
    assert vmem_est <= vmem_limit, (
        f"tile choice (bt={bt}, tn={tn}) needs ~{vmem_est}B VMEM > limit {vmem_limit}B")

    grid = (B // bt, n_tokens // tn)
    kernel = functools.partial(feature_proj_kernel, bt=bt, tn=tn, n_tokens=n_tokens)

    cost = pl.CostEstimate(
        flops=(2 * B * n_tokens * patch_dim * E_PAD          # patch-embed matmul
               + 8 * B * n_tokens * E_PAD                    # bias + GELU pointwise
               + 2 * B * E_PAD * OUTPUT_DIM),                # projection
        transcendentals=B * n_tokens * E_PAD,                # tanh
        bytes_accessed=(B * n_tokens * patch_dim * 2 + weight_bytes
                        + B * OUTPUT_DIM * 4),
    )

    out = pl.pallas_call(
        kernel,
        out_shape=jax.ShapeDtypeStruct((B, OUTPUT_DIM), jnp.float32),
        grid_spec=pltpu.PrefetchScalarGridSpec(
            num_scalar_prefetch=0,
            grid=grid,
            in_specs=[
                pl.BlockSpec((bt, tn, patch_dim), lambda i, k: (i, k, 0)),   # patches
                pl.BlockSpec((patch_dim, E_PAD), lambda i, k: (0, 0)),       # patch_w
                pl.BlockSpec((1, E_PAD), lambda i, k: (0, 0)),               # patch_b
                pl.BlockSpec((E_PAD, OUTPUT_DIM), lambda i, k: (0, 0)),      # fc_w
                pl.BlockSpec((1, OUTPUT_DIM), lambda i, k: (0, 0)),          # fc_b
            ],
            out_specs=pl.BlockSpec((bt, OUTPUT_DIM), lambda i, k: (i, 0)),
            scratch_shapes=[pltpu.VMEM((bt, E_PAD), jnp.float32)],
        ),
        compiler_params=pltpu.CompilerParams(
            dimension_semantics=("parallel", "arbitrary"),
            vmem_limit_bytes=vmem_limit,
            allow_input_fusion=[True, True, True, True, True],
        ),
        cost_estimate=cost,
    )(patches, pw, pb, fw, fb)
    return out


def _reference(x, params, patch_size=4):
    # Pure-JAX reference, matching the kernel's bf16-operand / f32-accum numerics.
    B, C, H, W = x.shape
    ps = patch_size
    nH, nW = H // ps, W // ps
    n_tokens = nH * nW
    patches = x.astype(jnp.bfloat16).reshape(B, C, nH, ps, nW, ps)
    patches = patches.transpose(0, 2, 4, 1, 3, 5).reshape(B * n_tokens, C * ps * ps)
    feats = jnp.dot(patches, params["patch_w"].astype(jnp.bfloat16),
                    preferred_element_type=jnp.float32)
    feats = _gelu(feats + params["patch_b"])
    feats = feats.reshape(B, n_tokens, EMBED_DIM)
    pooled = feats.mean(axis=1)
    return pooled @ params["fc_w"] + params["fc_b"]


if __name__ == "__main__":
    key = jax.random.PRNGKey(0)
    k_x, k_p1, k_p2 = jax.random.split(key, 3)

    B, C, H, W = 2, 4, 16, 16
    x = jax.random.normal(k_x, (B, C, H, W), jnp.float32)   # NCHW, like PyTorch

    # Config 1: patch_size=2 -> 64 tokens, patch_dim=16; token_tile=16 exercises
    # the multi-step token reduction / accumulator path (token grid of 4).
    ps1 = 2
    params1 = init_params(k_p1, patch_dim=C * ps1 * ps1)
    out1 = jax.block_until_ready(
        feature_extractor_with_projection(x, params1, patch_size=ps1, token_tile=16))
    ref1 = _reference(x, params1, patch_size=ps1)
    assert out1.shape == (B, OUTPUT_DIM), out1.shape
    assert jnp.allclose(out1, ref1, atol=5e-3, rtol=5e-3), "mismatch vs reference (ps=2)"

    # Config 2: patch_size=4 -> 16 tokens, patch_dim=64; default (single-step) tiling.
    ps2 = 4
    params2 = init_params(k_p2, patch_dim=C * ps2 * ps2)
    out2 = jax.block_until_ready(
        feature_extractor_with_projection(x, params2, patch_size=ps2))
    ref2 = _reference(x, params2, patch_size=ps2)
    assert out2.shape == (B, OUTPUT_DIM), out2.shape
    assert jnp.allclose(out2, ref2, atol=5e-3, rtol=5e-3), "mismatch vs reference (ps=4)"

    print("KERNEL_OK")
</pallas_src>

<mosaic_0001>
module attributes {stable_mosaic.version = 11 : i64} {
  func.func @feature_proj_kernel(%arg0: i32, %arg1: i32, %arg2: memref<2x16x16xbf16, #tpu.memory_space<vmem>>, %arg3: memref<16x256xbf16, #tpu.memory_space<vmem>>, %arg4: memref<1x256xf32, #tpu.memory_space<vmem>>, %arg5: memref<256x128xf32, #tpu.memory_space<vmem>>, %arg6: memref<1x128xf32, #tpu.memory_space<vmem>>, %arg7: memref<2x128xf32, #tpu.memory_space<vmem>>, %arg8: memref<2x256xf32, #tpu.memory_space<vmem>>) attributes {dimension_semantics = [#tpu.dimension_semantics<parallel>, #tpu.dimension_semantics<arbitrary>], iteration_bounds = array<i64: 1, 4>, scalar_prefetch = 0 : i64, scratch_operands = 1 : i64, tpu.core_type = #tpu.core_type<tc>, window_params = [{transform_indices = @transform_0, window_bounds = array<i64: 2, 16, 16>}, {pipeline_mode = #tpu.pipeline_mode<synchronous>, transform_indices = @transform_1, window_bounds = array<i64: 16, 256>}, {pipeline_mode = #tpu.pipeline_mode<synchronous>, transform_indices = @transform_2, window_bounds = array<i64: 1, 256>}, {pipeline_mode = #tpu.pipeline_mode<synchronous>, transform_indices = @transform_3, window_bounds = array<i64: 256, 128>}, {pipeline_mode = #tpu.pipeline_mode<synchronous>, transform_indices = @transform_4, window_bounds = array<i64: 1, 128>}, {transform_indices = @transform_5, window_bounds = array<i64: 2, 128>}]} {
    %c0_i32 = arith.constant 0 : i32
    %0 = arith.cmpi eq, %arg1, %c0_i32 : i32
    %1 = arith.extui %0 : i1 to i32
    %c0_i32_0 = arith.constant 0 : i32
    %2 = arith.cmpi ne, %1, %c0_i32_0 : i32
    scf.if %2 {
      %cst_17 = arith.constant 0.000000e+00 : f32
      %30 = vector.broadcast %cst_17 : f32 to vector<2x256xf32>
      %c0_18 = arith.constant 0 : index
      %c0_19 = arith.constant 0 : index
      %31 = vector.load %arg8[%c0_18, %c0_19] : memref<2x256xf32, #tpu.memory_space<vmem>>, vector<2x256xf32>
      tpu.vector_store %arg8[%c0_18, %c0_19], %30 {strides = array<i32>} : memref<2x256xf32, #tpu.memory_space<vmem>>, vector<2x256xf32>,
    } else {
    }
    %c0 = arith.constant 0 : index
    %c0_1 = arith.constant 0 : index
    %c0_2 = arith.constant 0 : index
    %3 = vector.load %arg2[%c0, %c0_1, %c0_2] : memref<2x16x16xbf16, #tpu.memory_space<vmem>>, vector<2x16x16xbf16>
    %4 = vector.shape_cast %3 : vector<2x16x16xbf16> to vector<32x16xbf16>
    %c0_3 = arith.constant 0 : index
    %c0_4 = arith.constant 0 : index
    %5 = vector.load %arg3[%c0_3, %c0_4] : memref<16x256xbf16, #tpu.memory_space<vmem>>, vector<16x256xbf16>
    %cst = arith.constant dense<0.000000e+00> : vector<32x256xf32>
    %6 = tpu.matmul %4, %5, %cst {dimension_numbers = #tpu.dot_dimension_numbers<[1], [0], [0], [1], [0, 0, 1, 1], [], []>} : vector<32x16xbf16>, vector<16x256xbf16>, vector<32x256xf32> -> vector<32x256xf32>
    %c0_5 = arith.constant 0 : index
    %c0_6 = arith.constant 0 : index
    %7 = vector.load %arg4[%c0_5, %c0_6] : memref<1x256xf32, #tpu.memory_space<vmem>>, vector<1x256xf32>
    %8 = vector.broadcast %7 : vector<1x256xf32> to vector<32x256xf32>
    %9 = arith.addf %6, %8 : vector<32x256xf32>
    %10 = arith.mulf %9, %9 : vector<32x256xf32>
    %cst_7 = arith.constant 0.0356774069 : f32
    %11 = vector.broadcast %cst_7 : f32 to vector<32x256xf32>
    %12 = arith.mulf %11, %10 : vector<32x256xf32>
    %cst_8 = arith.constant 0.797884583 : f32
    %13 = vector.broadcast %cst_8 : f32 to vector<32x256xf32>
    %14 = arith.addf %13, %12 : vector<32x256xf32>
    %15 = arith.mulf %9, %14 : vector<32x256xf32>
    %16 = math.tanh %15 : vector<32x256xf32>
    %cst_9 = arith.constant 5.000000e-01 : f32
    %17 = vector.broadcast %cst_9 : f32 to vector<32x256xf32>
    %18 = arith.mulf %17, %16 : vector<32x256xf32>
    %cst_10 = arith.constant 5.000000e-01 : f32
    %19 = vector.broadcast %cst_10 : f32 to vector<32x256xf32>
    %20 = arith.addf %19, %18 : vector<32x256xf32>
    %21 = arith.mulf %9, %20 : vector<32x256xf32>
    %22 = vector.shape_cast %21 : vector<32x256xf32> to vector<2x16x256xf32>
    %c0_11 = arith.constant 0 : index
    %c0_12 = arith.constant 0 : index
    %23 = vector.load %arg8[%c0_11, %c0_12] : memref<2x256xf32, #tpu.memory_space<vmem>>, vector<2x256xf32>
    %cst_13 = arith.constant dense<0.000000e+00> : vector<2x256xf32>
    %24 = vector.multi_reduction <add>, %22, %cst_13 [1] : vector<2x16x256xf32> to vector<2x256xf32>
    %25 = arith.addf %23, %24 : vector<2x256xf32>
    %c0_14 = arith.constant 0 : index
    %c0_15 = arith.constant 0 : index
    %26 = vector.load %arg8[%c0_14, %c0_15] : memref<2x256xf32, #tpu.memory_space<vmem>>, vector<2x256xf32>
    tpu.vector_store %arg8[%c0_14, %c0_15], %25 {strides = array<i32>} : memref<2x256xf32, #tpu.memory_space<vmem>>, vector<2x256xf32>,
    %c3_i32 = arith.constant 3 : i32
    %27 = arith.cmpi eq, %arg1, %c3_i32 : i32
    %28 = arith.extui %27 : i1 to i32
    %c0_i32_16 = arith.constant 0 : i32
    %29 = arith.cmpi ne, %28, %c0_i32_16 : i32
    scf.if %29 {
      %c0_17 = arith.constant 0 : index
      %c0_18 = arith.constant 0 : index
      %30 = vector.load %arg8[%c0_17, %c0_18] : memref<2x256xf32, #tpu.memory_space<vmem>>, vector<2x256xf32>
      %cst_19 = arith.constant 1.562500e-02 : f32
      %31 = vector.broadcast %cst_19 : f32 to vector<2x256xf32>
      %32 = arith.mulf %30, %31 : vector<2x256xf32>
      %c0_20 = arith.constant 0 : index
      %c0_21 = arith.constant 0 : index
      %33 = vector.load %arg5[%c0_20, %c0_21] : memref<256x128xf32, #tpu.memory_space<vmem>>, vector<256x128xf32>
      %cst_22 = arith.constant dense<0.000000e+00> : vector<2x128xf32>
      %34 = tpu.matmul %32, %33, %cst_22 {dimension_numbers = #tpu.dot_dimension_numbers<[1], [0], [0], [1], [0, 0, 1, 1], [], []>} : vector<2x256xf32>, vector<256x128xf32>, vector<2x128xf32> -> vector<2x128xf32>
      %c0_23 = arith.constant 0 : index
      %c0_24 = arith.constant 0 : index
      %35 = vector.load %arg6[%c0_23, %c0_24] : memref<1x128xf32, #tpu.memory_space<vmem>>, vector<1x128xf32>
      %36 = vector.broadcast %35 : vector<1x128xf32> to vector<2x128xf32>
      %37 = arith.addf %34, %36 : vector<2x128xf32>
      %c0_25 = arith.constant 0 : index
      %c0_26 = arith.constant 0 : index
      %38 = vector.load %arg7[%c0_25, %c0_26] : memref<2x128xf32, #tpu.memory_space<vmem>>, vector<2x128xf32>
      tpu.vector_store %arg7[%c0_25, %c0_26], %37 {strides = array<i32>} : memref<2x128xf32, #tpu.memory_space<vmem>>, vector<2x128xf32>,
    } else {
    }
    return
  }
  func.func @transform_0(%arg0: i32, %arg1: i32) -> (i32, i32, i32) {
    %c0_i32 = arith.constant 0 : i32
    %c0_i32_0 = arith.constant 0 : i32
    return %arg0, %arg1, %c0_i32 : i32, i32, i32
  }
  func.func @transform_1(%arg0: i32, %arg1: i32) -> (i32, i32) {
    %c0_i32 = arith.constant 0 : i32
    %c0_i32_0 = arith.constant 0 : i32
    %c0_i32_1 = arith.constant 0 : i32
    return %c0_i32, %c0_i32_0 : i32, i32
  }
  func.func @transform_2(%arg0: i32, %arg1: i32) -> (i32, i32) {
    %c0_i32 = arith.constant 0 : i32
    %c0_i32_0 = arith.constant 0 : i32
    %c0_i32_1 = arith.constant 0 : i32
    return %c0_i32, %c0_i32_0 : i32, i32
  }
  func.func @transform_3(%arg0: i32, %arg1: i32) -> (i32, i32) {
    %c0_i32 = arith.constant 0 : i32
    %c0_i32_0 = arith.constant 0 : i32
    %c0_i32_1 = arith.constant 0 : i32
    return %c0_i32, %c0_i32_0 : i32, i32
  }
  func.func @transform_4(%arg0: i32, %arg1: i32) -> (i32, i32) {
    %c0_i32 = arith.constant 0 : i32
    %c0_i32_0 = arith.constant 0 : i32
    %c0_i32_1 = arith.constant 0 : i32
    return %c0_i32, %c0_i32_0 : i32, i32
  }
  func.func @transform_5(%arg0: i32, %arg1: i32) -> (i32, i32) {
    %c0_i32 = arith.constant 0 : i32
    %c0_i32_0 = arith.constant 0 : i32
    return %arg0, %c0_i32 : i32, i32
  }
}

</mosaic_0001>

<bundles_post_ra>
// kernel: feature_extractor_with_projection.2
= control target key start
LH: loop header
LB: loop body
LE: loop exit
PB: predicated region body
PF: predicated region fallthrough
CT: control target
= control target key end

     0   :  { %s1599_s0 = inlined_call_operand.vmem [shape: bf16[2,64,16], index: 0, kind: input, shape index: {}]   ;;  %s1600_s1 = inlined_call_operand.vmem [shape: f32[1,128], index: 1, kind: input, shape index: {}]   ;;  %s1601_s2 = inlined_call_operand.vmem [shape: f32[192,128], index: 2, kind: input, shape index: {}]   ;;  %s1602_s3 = inlined_call_operand.<no memory space> [shape: f32[], index: 3, kind: input, shape index: {}]   ;;  %s1603_s4 = inlined_call_operand.vmem [shape: bf16[16,192], index: 4, kind: input, shape index: {}]   ;;  %s1604_s5 = inlined_call_operand.<no memory space> [shape: bf16[], index: 5, kind: input, shape index: {}]   ;;  %s1605_s6 = inlined_call_operand.vmem [shape: f32[1,192], index: 6, kind: input, shape index: {}]   ;;  %s1606_s7 = inlined_call_operand.hbm [shape: f32[2,128], index: 7, kind: output, shape index: {}]  }
   0x1   :  { %v12_v0 = vstv %s1604_s5  ;;  %v1360_v1 = vstv %s1602_s3 }
   0x2   :  { %v1362_v2 = vunpack.i.l.bf16 %v12_v0 }
   0x3   :  { %19 = vsyncpa [#allocation20], 0  ;;  %s1364_s28 = smov 0   ;;  %s1366_s29 = smov 0  }
   0x4   :  { %s1368_s30 = smov 0   ;;  %s1370_s8 = smov 0  }
   0x5   :  { %s1372_s9 = smov 0  }
   0x6 LB: > { %s1060_s3 = sadd.s32 4294967295, %s1307_s9   ;;  %s34_s5 = sadd.s32 1, %s1303_s8  ;;  %s1307_s9 = sphi %s1372_s9, %s25_s9   ;;  %s1303_s8 = sphi %s1370_s8, %s1611_s8   ;;  %s1299_s30 = sphi %s1368_s30, %s1610_s30   ;;  %s1295_s29 = sphi %s1366_s29, %s1609_s29   ;;  %s1291_s28 = sphi %s1364_s28, %s1608_s28  }
   0x7   : > { %p35_p0 = scmp.ge.s32.totalorder %s34_s5, 4  ;;  %p53_p1 = scmp.ne.s32.totalorder %s1295_s29, %s1291_s28 }
   0x8   : > { %p54_p2 = scmp.eq.s32.totalorder %s1307_s9, 0  ;;  %s46_s11 = sadd.s32 1, %s1295_s29 }
   0x9   : > { %s1613_s5 = smov (%p35_p0, %s34_s5), 0  ;;  %p1062_p5 = scmp.ge.s32.totalorder %s1307_s9, 4 }
   0xa   : > { %p55_p3 = por %p54_p2, %p53_p1  ;;  %s42_s10 = ssub.s32 %s1303_s8, %s1613_s5 }
   0xb   : > { %p44_p4 = scmp.eq.s32.totalorder %s42_s10, 0  ;;  %201 = sbr.rel (%p1062_p5) target bundleno = 22 (0x16), region = 32 }
   0xd   : > { %s1400_s12 = scalar_select %p44_p4, %s1295_s29, %s46_s11  }
  0x10   : > { %204 = sbr.rel (!%p55_p3) target bundleno = 22 (0x16), region = 36  ;;  %s206_s13 = sand.u32 (%p55_p3), 1, %s1295_s29  }
  0x11   : > { %s1131_s14 = sshll.u32 (%p55_p3), %s1303_s8, 3  ;;  %s1063_s15 = sshll.u32 (%p55_p3), %s206_s13, 4 }
  0x12   : > { %s214_s18 = scalar_lea.vmem (%p55_p3), %s1599_s0, %s1131_s14  ;;  %s208_s19 = scalar_lea.vmem (%p55_p3), [#allocation18], %s1063_s15 }
  0x13   : > { %v231_v3 = vld [vmem:[%s214_s18] sm:$0xff] (%p55_p3)  }
  0x14   : > { %v235_v4 = vld [vmem:[%s214_s18 + $0x20] sm:$0xff] (%p55_p3)   ;;  %232 = vst [vmem:[%s208_s19] sm:$0xff] (%p55_p3), %v231_v3  }
  0x15   : > { %236 = vst [vmem:[%s208_s19 + $0x8] sm:$0xff] %v235_v4  }
  0x16 PF: > { %p1066_p6 = scmp.ge.s32.totalorder %s1307_s9, 1  ;;  %p269_p7 = scmp.lt.s32.totalorder %s1307_s9, 5 }
  0x18   : > { %p270_p8 = pnand %p1066_p6, %p269_p7 }
  0x1a   : > { %273 = sbr.rel (%p270_p8) target bundleno = 560 (0x230), region = 77 }
  0x1f   : > { %s276_s20 = sand.u32 1, %s1291_s28   ;;  %v300_v5 = vld [vmem:[%s1603_s4] sm:$0xf]  ;;  %v1068_v6 = vld [vmem:[%s1603_s4 + $0x4] ss:$8 sps:$4 sm:$0xff]   ;;  %v325_v7 = vlaneseq  ;;  %v1309_v21 = vmov 0.0  }
  0x20   : > { %s1417_s25 = sshll.u32 %s276_s20, 4  ;;  %311 = vst [vmem:[#allocation21] sm:$0xf] %v300_v5  ;;  %v1069_v8 = vld [vmem:[%s1603_s4 + $0x8] sm:$0xf]  ;;  %v323_v13 = vunpack.c.l.bf16 %v1068_v6  ;;  %v360_v14 = vunpack.c.h.bf16 %v1068_v6  ;;  %p1095_p9 = scmp.ne.s32.totalorder %s1299_s30, 0 }
  0x21   : > { %v372_v9 = vld [vmem:[%s1605_s6] sm:$0x1]  ;;  %v326_v10 = vand.u32 127, %v325_v7  ;;  %348 = vst [vmem:[#allocation21 + $0x8] sm:$0xf] %v1069_v8  ;;  %v1425_v11 = vshrl.u32 %v325_v7, 7 }
  0x22   : > { %v1071_v12 = vld [vmem:[%s1605_s6 + $0x1] sm:$0x1]  ;;  %s278_s14 = scalar_lea.vmem [#allocation18], %s1417_s25 }
  0x23   : > { %v327_v15 = vadd.s32 128, %v326_v10  ;;  %vm376_vm0 = vcmp.lt.s32.totalorder %v1425_v11, 1 }
  0x24   : > { %v377_v16 = vsel %vm376_vm0, %v372_v9, %v1360_v1  ;;  %v392_v17 = vsel %vm376_vm0, %v1071_v12, %v1360_v1 }
  0x25   : > { %vm328_vm1 = vcmp.lt.s32.totalorder %v327_v15, 192  ;;  %385 = vst [vmem:[#allocation22] sm:$0x1] %v377_v16  ;;  %580 = sbr.rel (%p1095_p9) target bundleno = 44 (0x2c), region = 85 }
  0x26   : > { %v329_v18 = vsel %vm328_vm1, %v323_v13, %v1362_v2  ;;  %v366_v19 = vsel %vm328_vm1, %v360_v14, %v1362_v2  ;;  %v397_v20 = vsel %vm328_vm1, %v392_v17, %v1360_v1 }
  0x27   : > { %v331_v22 = vpack.c.bf16 %v1309_v21, %v329_v18  ;;  %v368_v23 = vpack.c.bf16 %v1309_v21, %v366_v19  ;;  %401 = vst [vmem:[#allocation22 + $0x1] sm:$0x1] %v397_v20 }
  0x29   : > { %334 = vst [vmem:[#allocation21 + $0x4] sm:$0xf] %v331_v22  ;;  %371 = vst [vmem:[#allocation21 + $0xc] sm:$0xf] %v368_v23 }
  0x2a   : > { %v1310_v24 = vmov 0.0  }
  0x2b   : > { %581 = vst [vmem:[#allocation2] sm:$0xf] %v1310_v24 }
  0x2c PF: > { %v1222_v26 = vld [vmem:[#allocation21] ss:$8 sps:$4 sm:$0xff]   ;;  %v1311_v27 = vmov 0   ;;  %vm620_vm2 = vcmask 130048   ;;  %v592_v30 = vsub.s32 0, %v1425_v11  ;;  %v596_v32 = vsub.s32 1, %v1425_v11 }
  0x2d   : > { %659 = vmatprep.mubr.bf16.mxu0 %v1311_v27  ;;  %669 = vmatprep.mubr.bf16.mxu1 %v1311_v27  ;;  %v1223_v28 = vld [vmem:[%s278_s14] sm:$0xff]   ;;  %v1224_v29 = vld [vmem:[%s278_s14 + $0x8] sm:$0xff]   ;;  %vm798_vm3 = vcmask 1041409   ;;  %vm800_vm4 = vcmask 1043459   ;;  %vm802_vm5 = vcmask 1045509   ;;  %vm804_vm6 = vcmask 1047559  }
  0x2e   : > { %p1102_p10 = scmp.ne.s32.totalorder %s1299_s30, 3 }
  0x30   : > { %v588_v31 = vld [vmem:[#allocation22] sm:$0x3] }
  0x31   : > { %v593_v33 = vrot.slane %v588_v31, %v592_v30  ;;  %v597_v34 = vrot.slane %v588_v31, %v596_v32 }
  0x32   : > { %v1220_v25 = vld [vmem:[#allocation21 + $0x4] ss:$8 sps:$4 sm:$0xff]  }
  0x33   : > { %641 = vmatprep.subr.bf16.mxu0 %v1220_v25  ;;  %1167 = vmatprep.subr.bf16.mxu1 %v1220_v25 }
  0x34   : > { %642 = vmatpush1.bf16.msra.mxu0 %v1222_v26  ;;  %1168 = vmatpush1.bf16.msra.mxu1 %v1222_v26 }
  0x37   : > { %1100 = vmatmul.mubr.msk.bf16.vlgmr.msra.gmra.mxu0 %vm620_vm2, %v1223_v28  ;;  %1101 = vmatmul.mubr.msk.bf16.vlgmr.msra.gmra.mxu1 %vm620_vm2, %v1224_v29 }
  0xf7   : > { %v661_v35 = vpop.f32.mrf.mxu0  ;;  %v671_v36 = vpop.f32.mrf.mxu1 }
  0xf8   : > { %v1440_v37 = vadd.f32 %v661_v35, %v593_v33  ;;  %v1442_v38 = vadd.f32 %v671_v36, %v593_v33 }
  0xf9   : > { %v663_v39 = vpop.f32.mrf.mxu0  ;;  %v673_v40 = vpop.f32.mrf.mxu1 }
  0xfa   : > { %v680_v41 = vmul.f32 %v1440_v37, %v1440_v37  ;;  %v684_v42 = vmul.f32 %v1442_v38, %v1442_v38  ;;  %v1448_v43 = vadd.f32 %v663_v39, %v597_v34  ;;  %v1450_v44 = vadd.f32 %v673_v40, %v597_v34 }
  0xfb   : > { %v665_v45 = vpop.f32.mrf.mxu0  ;;  %v675_v46 = vpop.f32.mrf.mxu1 }
  0xfc   : > { %v688_v47 = vmul.f32 0.035677407, %v680_v41  ;;  %v692_v48 = vmul.f32 0.035677407, %v684_v42  ;;  %v681_v49 = vmul.f32 %v1448_v43, %v1448_v43  ;;  %v685_v50 = vmul.f32 %v1450_v44, %v1450_v44 }
  0xfd   : > { %v1456_v51 = vadd.f32 %v665_v45, %v593_v33  ;;  %v1458_v52 = vadd.f32 %v675_v46, %v593_v33  ;;  %v667_v53 = vpop.f32.mrf.mxu0  ;;  %v677_v54 = vpop.f32.mrf.mxu1 }
  0xfe   : > { %v696_v55 = vadd.f32 0.7978846, %v688_v47  ;;  %v700_v56 = vadd.f32 0.7978846, %v692_v48  ;;  %v689_v57 = vmul.f32 0.035677407, %v681_v49  ;;  %v1460_v58 = vadd.f32 %v667_v53, %v597_v34 }
  0xff   : > { %v693_v59 = vmul.f32 0.035677407, %v685_v50  ;;  %v682_v60 = vmul.f32 %v1456_v51, %v1456_v51  ;;  %v686_v61 = vmul.f32 %v1458_v52, %v1458_v52  ;;  %v678_v62 = vadd.f32 %v677_v54, %v597_v34 }
 0x100   : > { %v704_v63 = vmul.f32 %v696_v55, %v1440_v37  ;;  %v708_v0 = vmul.f32 %v700_v56, %v1442_v38  ;;  %v697_v3 = vadd.f32 0.7978846, %v689_v57  ;;  %v683_v4 = vmul.f32 %v1460_v58, %v1460_v58 }
 0x101   : > { %v701_v5 = vadd.f32 0.7978846, %v693_v59  ;;  %v690_v6 = vmul.f32 0.035677407, %v682_v60  ;;  %v694_v7 = vmul.f32 0.035677407, %v686_v61  ;;  %v687_v8 = vmul.f32 %v678_v62, %v678_v62 }
 0x102   : > { %1225 = vtanh.f32 %v704_v63  ;;  %v705_v9 = vmul.f32 %v697_v3, %v1448_v43  ;;  %v691_v10 = vmul.f32 0.035677407, %v683_v4 }
 0x103   : > { %1227 = vtanh.f32 %v708_v0  ;;  %v709_v12 = vmul.f32 %v701_v5, %v1450_v44  ;;  %v698_v13 = vadd.f32 0.7978846, %v690_v6  ;;  %v702_v14 = vadd.f32 0.7978846, %v694_v7 }
 0x104   : > { %1229 = vtanh.f32 %v705_v9  ;;  %v699_v15 = vadd.f32 0.7978846, %v691_v10  ;;  %v695_v16 = vmul.f32 0.035677407, %v687_v8  ;;  %v1312_v9 = vmov 1983009808  }
 0x105   : > { %1231 = vtanh.f32 %v709_v12  ;;  %v706_v17 = vmul.f32 %v698_v13, %v1456_v51  ;;  %v710_v18 = vmul.f32 %v702_v14, %v1458_v52 }
 0x106   : > { %v707_v19 = vmul.f32 %v699_v15, %v1460_v58  ;;  %v703_v20 = vadd.f32 0.7978846, %v695_v16 }
 0x107   : > { %1233 = vtanh.f32 %v706_v17 }
 0x108   : > { %1235 = vtanh.f32 %v710_v18  ;;  %v711_v21 = vmul.f32 %v703_v20, %v678_v62 }
 0x109   : > { %1237 = vtanh.f32 %v707_v19 }
 0x10a   : > { %1239 = vtanh.f32 %v711_v21 }
 0x10f   : > { %v1226_v22 = vpop.eup %1225 }
 0x110   : > { %v1228_v23 = vpop.eup %1227  ;;  %v720_v25 = vmul.f32 0.5, %v1226_v22 }
 0x111   : > { %v1230_v24 = vpop.eup %1229  ;;  %v724_v27 = vmul.f32 0.5, %v1228_v23 }
 0x112   : > { %v1232_v26 = vpop.eup %1231  ;;  %v721_v28 = vmul.f32 0.5, %v1230_v24  ;;  %v728_v32 = vadd.f32 0.5, %v720_v25 }
 0x113   : > { %v725_v30 = vmul.f32 0.5, %v1232_v26  ;;  %v732_v35 = vadd.f32 0.5, %v724_v27 }
 0x114   : > { %v1234_v29 = vpop.eup %1233  ;;  %v729_v40 = vadd.f32 0.5, %v721_v28  ;;  %v736_v48 = vmul.f32 %v728_v32, %v1440_v37 }
 0x115   : > { %v1236_v31 = vpop.eup %1235  ;;  %v722_v33 = vmul.f32 0.5, %v1234_v29  ;;  %v733_v45 = vadd.f32 0.5, %v725_v30  ;;  %v740_v53 = vmul.f32 %v732_v35, %v1442_v38 }
 0x116   : > { %v1238_v34 = vpop.eup %1237  ;;  %v726_v36 = vmul.f32 0.5, %v1236_v31  ;;  %v737_v56 = vmul.f32 %v729_v40, %v1448_v43  ;;  %v779_v43 = vunpack.c.l.s4 %v1312_v9  ;;  %v744_v31 = vld [vmem:[#allocation2] sm:$0xf] }
 0x117   : > { %v1240_v39 = vpop.eup %1239  ;;  %v730_v41 = vadd.f32 0.5, %v722_v33  ;;  %v723_v42 = vmul.f32 0.5, %v1238_v34  ;;  %v741_v60 = vmul.f32 %v733_v45, %v1450_v44 }
 0x118   : > { %v734_v46 = vadd.f32 0.5, %v726_v36  ;;  %v727_v47 = vmul.f32 0.5, %v1240_v39  ;;  %v780_v16 = vunpack.c.0.s8 %v779_v43 }
 0x119   : > { %v738_v49 = vmul.f32 %v730_v41, %v1456_v51  ;;  %v731_v50 = vadd.f32 0.5, %v723_v42 }
 0x11a   : > { %v742_v54 = vmul.f32 %v734_v46, %v1458_v52  ;;  %v735_v55 = vadd.f32 0.5, %v727_v47  ;;  %v783_v23 = vsub.s32 %v780_v16, %v1425_v11 }
 0x11b   : > { %v745_v57 = vadd.f32 %v738_v49, %v736_v48  ;;  %v739_v59 = vmul.f32 %v731_v50, %v1460_v58 }
 0x11c   : > { %v759_v61 = vadd.f32 %v742_v54, %v740_v53  ;;  %v743_v63 = vmul.f32 %v735_v55, %v678_v62 }
 0x11d   : > { %v746_v0 = vrot.slane %v745_v57, 4  ;;  %v752_v3 = vadd.f32 %v739_v59, %v737_v56 }
 0x11e   : > { %v760_v37 = vrot.slane %v759_v61, 4  ;;  %v766_v4 = vadd.f32 %v743_v63, %v741_v60 }
 0x11f   : > { %v747_v51 = vadd.f32 %v746_v0, %v745_v57  ;;  %v753_v5 = vrot.slane %v752_v3, 4 }
 0x120   : > { %v761_v6 = vadd.f32 %v760_v37, %v759_v61  ;;  %v767_v38 = vrot.slane %v766_v4, 4 }
 0x121   : > { %v748_v7 = vrot.slane %v747_v51, 2  ;;  %v754_v52 = vadd.f32 %v753_v5, %v752_v3 }
 0x122   : > { %v762_v8 = vrot.slane %v761_v6, 2  ;;  %v768_v10 = vadd.f32 %v767_v38, %v766_v4 }
 0x123   : > { %v749_v12 = vadd.f32 %v748_v7, %v747_v51  ;;  %v755_v58 = vrot.slane %v754_v52, 2 }
 0x124   : > { %v763_v13 = vadd.f32 %v762_v8, %v761_v6  ;;  %v769_v44 = vrot.slane %v768_v10, 2 }
 0x125   : > { %v756_v14 = vadd.f32 %v755_v58, %v754_v52  ;;  %v750_v62 = vrot.slane %v749_v12, 1 }
 0x126   : > { %v764_v15 = vrot.slane %v763_v13, 1  ;;  %v770_v17 = vadd.f32 %v769_v44, %v768_v10 }
 0x127   : > { %v757_v18 = vrot.slane %v756_v14, 1  ;;  %v751_v21 = vadd.f32 %v750_v62, %v749_v12 }
 0x128   : > { %v771_v19 = vrot.slane %v770_v17, 1  ;;  %v765_v22 = vadd.f32 %v764_v15, %v763_v13 }
 0x129   : > { %v758_v20 = vadd.f32 %v757_v18, %v756_v14 }
 0x12a   : > { %v772_v24 = vadd.f32 %v771_v19, %v770_v17 }
 0x12b   : > { %v777_v25 = vcombine.low %v751_v21, %v758_v20 }
 0x12c   : > { %v785_v26 = vcombine.low %v765_v22, %v772_v24 }
 0x12d   : > { %v784_v28 = vrot.slane %v777_v25, %v783_v23 }
 0x12e   : > { %v792_v27 = vrot.slane %v785_v26, %v783_v23 }
 0x130   : > { %v797_v29 = vrot.slane %v792_v27, 7 }
 0x132   : > { %v799_v30 = vsel %vm798_vm3, %v797_v29, %v784_v28 }
 0x133   : > { %v801_v32 = vsel %vm800_vm4, %v797_v29, %v799_v30 }
 0x134   : > { %v803_v33 = vsel %vm802_vm5, %v797_v29, %v801_v32  ;;  %812 = sbr.rel (%p1102_p10) target bundleno = 545 (0x221), region = 89 }
 0x135   : > { %v805_v34 = vsel %vm804_vm6, %v797_v29, %v803_v33 }
 0x136   : > { %v807_v35 = vadd.f32 %v805_v34, %v744_v31 }
 0x138   : > { %808 = vst [vmem:[#allocation2] sm:$0xf] %v807_v35 }
 0x139   : > { %1132 = vmatprep.subr.mxu0 %v1360_v1  ;;  %v1117_v11 = vld [vmem:[%s1601_s2 + $0x78] sm:$0xff]  ;;  %v1116_v36 = vld [vmem:[%s1601_s2 + $0x70] sm:$0xff]  ;;  %v1115_v39 = vld [vmem:[%s1601_s2 + $0x68] sm:$0xff] }
 0x13a   : > { %1133 = vmatpush3.msra.mxu0 %v1117_v11  ;;  %v1114_v40 = vld [vmem:[%s1601_s2 + $0x60] sm:$0xff]  ;;  %v1113_v41 = vld [vmem:[%s1601_s2 + $0x58] sm:$0xff]  ;;  %v1112_v42 = vld [vmem:[%s1601_s2 + $0x50] sm:$0xff] }
 0x13b   : > { %1134 = vmatprep.subr.mxu0 %v1360_v1  ;;  %v1111_v47 = vld [vmem:[%s1601_s2 + $0x48] sm:$0xff]  ;;  %v1110_v49 = vld [vmem:[%s1601_s2 + $0x40] sm:$0xff]  ;;  %v1125_v50 = vld [vmem:[%s1601_s2 + $0xb8] sm:$0xff] }
 0x13c   : > { %1135 = vmatpush3.msra.mxu0 %v1116_v36  ;;  %v1109_v54 = vld [vmem:[%s1601_s2 + $0x38] sm:$0xff]  ;;  %v1124_v55 = vld [vmem:[%s1601_s2 + $0xb0] sm:$0xff]  ;;  %v1123_v57 = vld [vmem:[%s1601_s2 + $0xa8] sm:$0xff] }
 0x13d   : > { %1136 = vmatprep.subr.mxu0 %v1360_v1  ;;  %v1108_v56 = vld [vmem:[%s1601_s2 + $0x30] sm:$0xff]  ;;  %v1107_v59 = vld [vmem:[%s1601_s2 + $0x28] sm:$0xff]  ;;  %v1122_v60 = vld [vmem:[%s1601_s2 + $0xa0] sm:$0xff] }
 0x13e   : > { %1137 = vmatpush3.msra.mxu0 %v1115_v39  ;;  %v1106_v61 = vld [vmem:[%s1601_s2 + $0x20] sm:$0xff]  ;;  %v1121_v63 = vld [vmem:[%s1601_s2 + $0x98] sm:$0xff]  ;;  %v1120_v3 = vld [vmem:[%s1601_s2 + $0x90] sm:$0xff] }
 0x13f   : > { %1138 = vmatprep.subr.mxu0 %v1360_v1  ;;  %v813_v45 = vld [vmem:[#allocation2] sm:$0xf]  ;;  %v1105_v0 = vld [vmem:[%s1601_s2 + $0x18] sm:$0xff]  ;;  %v1104_v37 = vld [vmem:[%s1601_s2 + $0x10] sm:$0xff] }
 0x140   : > { %1139 = vmatpush3.msra.mxu0 %v1114_v40  ;;  %v814_v46 = vmul.f32 0.015625, %v813_v45  ;;  %v1119_v4 = vld [vmem:[%s1601_s2 + $0x88] sm:$0xff]  ;;  %v1118_v5 = vld [vmem:[%s1601_s2 + $0x80] sm:$0xff] }
 0x141   : > { %1140 = vmatprep.subr.mxu0 %v1360_v1  ;;  %v1103_v51 = vld [vmem:[%s1601_s2 + $0x8] sm:$0xff]  ;;  %v1004_v6 = vld [vmem:[%s1601_s2] sm:$0xff] }
 0x142   : > { %1141 = vmatpush3.msra.mxu0 %v1113_v41  ;;  %v861_v48 = vrot.slane %v814_v46, %v783_v23  ;;  %v1126_v7 = vld [vmem:[%s1600_s1] ss:$0 sm:$0xff] }
 0x143   : > { %1142 = vmatprep.subr.mxu0 %v1360_v1 }
 0x144   : > { %1143 = vmatpush3.msra.mxu0 %v1112_v42  ;;  %v862_v53 = vcombine.high %v861_v48, %v861_v48 }
 0x145   : > { %1144 = vmatprep.subr.mxu0 %v1360_v1 }
 0x146   : > { %1145 = vmatpush3.msra.mxu0 %v1111_v47  ;;  %929 = vmatprep.mubr.f32.mxu0 %v862_v53 }
 0x147   : > { %1146 = vmatprep.subr.mxu0 %v1360_v1 }
 0x148   : > { %1147 = vmatpush3.msra.mxu0 %v1110_v49 }
 0x149   : > { %1148 = vmatprep.subr.mxu0 %v1125_v50 }
 0x14a   : > { %1149 = vmatpush3.msra.mxu0 %v1109_v54 }
 0x14b   : > { %1150 = vmatprep.subr.mxu0 %v1124_v55 }
 0x14c   : > { %1151 = vmatpush3.msra.mxu0 %v1108_v56 }
 0x14d   : > { %1152 = vmatprep.subr.mxu0 %v1123_v57 }
 0x14e   : > { %1153 = vmatpush3.msra.mxu0 %v1107_v59 }
 0x14f   : > { %1154 = vmatprep.subr.mxu0 %v1122_v60 }
 0x150   : > { %1155 = vmatpush3.msra.mxu0 %v1106_v61 }
 0x151   : > { %1156 = vmatprep.subr.mxu0 %v1121_v63 }
 0x152   : > { %1157 = vmatpush3.msra.mxu0 %v1105_v0 }
 0x153   : > { %1158 = vmatprep.subr.mxu0 %v1120_v3 }
 0x154   : > { %1159 = vmatpush3.msra.mxu0 %v1104_v37 }
 0x155   : > { %1160 = vmatprep.subr.mxu0 %v1119_v4 }
 0x156   : > { %1161 = vmatpush3.msra.mxu0 %v1103_v51 }
 0x157   : > { %1162 = vmatprep.subr.mxu0 %v1118_v5 }
 0x158   : > { %1163 = vmatpush3.msra.mxu0 %v1004_v6 }
 0x159   : > { %930 = vmatmul.mubr.f32.vlgmr.msra.gmra.mxu0 %v861_v48 }
 0x219   : > { %v1164_v38 = vpop.f32.mrf.mxu0 }
 0x21b   : > { %v1165_v52 = vpop.f32.mrf.mxu0 }
 0x21c   : > { %v1166_v8 = vadd.f32 %v1165_v52, %v1164_v38 }
 0x21e   : > { %v932_v9 = vadd.f32 %v1166_v8, %v1126_v7 }
 0x220   : > { %935 = vst [vmem:[#allocation19] sm:$0x3] %v932_v9 }
 0x221 PF: > { %p1569_p11 = scmp.eq.s32.totalorder %s1060_s3, 3  ;;  %s1313_s27 = smov [#allocation19]  }
 0x222   : > { %s945_s10 = sshll.u32 %s1313_s27, 4  ;;  %s946_s10 = int_to_ptr.vmem [resolvable:$true] %s945_s10 }
 0x223   : > { %s1241_s11 = scalar_lea.vmem %s946_s10, 32  ;;  %p1248_p1 = scmp.lt.s32.totalorder %s946_s10, %s946_s10 }
 0x224   : > { %p1242_p12 = scmp.ne.s32.totalorder %s946_s10, %s1241_s11  ;;  %p1249_p2 = scmp.lt.s32.totalorder %s1241_s11, %s1241_s11 }
 0x226   : > { %p1243_p13 = pnand %p1242_p12, %p1569_p11  ;;  %p1250_p3 = por %p1249_p2, %p1248_p1 }
 0x228   : > { %p1244_p0 = pneg %p1243_p13 }
 0x22a   : > { %p1251_p4 = pnand %p1250_p3, %p1244_p0 }
 0x22c   : > { %1254 = shalt.err (!%p1251_p4)
}
 0x22d   : > { %1170 = dma.vmem_to_hbm [thread:$0]  (%p1569_p11), %s946_s10, 32, %s1606_s7, [#allocation20]  }
 0x22e   : > { %1286 = dma.done.wait (%p1569_p11), [#allocation20], 32  }
 0x22f   : > { %1288 = vsyncadd (%p1569_p11), [#allocation20], 4294967264 }
 0x230 PF: > { %s25_s9 = sadd.s32 1, %s1307_s9   ;;  %s1608_s28 = smov %s1295_s29 }
 0x231   : > { %p22_p5 = scmp.ge.s32.totalorder %s25_s9, 6   ;;  %s1609_s29 = smov %s1400_s12 }
 0x232   : > { %s1610_s30 = smov %s1303_s8  ;;  %s1611_s8 = smov %s1613_s5 }
 0x233   :  { %24 = sbr.rel (!%p22_p5) target bundleno = 6 (0x6), region = 184 }
 0x238   :  { %958 = vsyncpa [#allocation20], 1 }
 0x239   :  { %960 = vsyncpa [#allocation20 + $0x1], 1 }

</bundles_post_ra>
